<compile_context>
chip_gen: v7x
topology: tpu7x:2x2x1
jax: 0.10.0
libtpu: 0.0.40
codegen_flags: <defaults>
</compile_context>

<pallas_src>
import functools

import jax
import jax.numpy as jnp
from jax.experimental import pallas as pl
from jax.experimental.pallas import tpu as pltpu


def _round_up(x, m):
    return ((x + m - 1) // m) * m


def _vmem_budget_bytes():
    """Generation-aware per-core VMEM budget (leave headroom for internal scratch)."""
    cap = 64 << 20  # conservative default: v7x per-TensorCore VMEM
    try:
        info = pltpu.get_tpu_info()
        cap = int(getattr(info, "vmem_capacity_bytes", cap))
    except Exception:
        pass
    if cap <= (64 << 20):
        # v7x-class (64 MiB per TC): cap well below physical for Mosaic scratch.
        return min(cap - (8 << 20), 56 << 20)
    # v5e / v6e (128 MiB physical): don't artificially cap at 64 MiB.
    return min(cap - (16 << 20), 110 << 20)


# ----------------------------- kernels ---------------------------------------


def _group_l1_mlp_kernel(num_hidden, x_ref, w0_ref, *rest):
    """Whole-MLP kernel: all weights resident, pre-transposed to [in, out]."""
    hidden_refs = rest[:num_hidden]
    wf_ref = rest[num_hidden]
    o_ref = rest[num_hidden + 1]

    # relu(group_l1) was already folded into w0 in the wrapper.
    h = jnp.dot(x_ref[...], w0_ref[...], preferred_element_type=jnp.float32)
    h = jnp.maximum(h, 0.0)

    for w_ref in hidden_refs:
        h = jnp.dot(h.astype(w_ref.dtype), w_ref[...],
                    preferred_element_type=jnp.float32)
        h = jnp.maximum(h, 0.0)

    out = jnp.dot(h.astype(wf_ref.dtype), wf_ref[...],
                  preferred_element_type=jnp.float32)
    o_ref[...] = out.astype(o_ref.dtype)


def _linear_kernel(apply_relu, x_ref, w_ref, o_ref):
    """Single layer (x @ W^T [+ relu]) for the layer-streaming fallback path."""
    h = jnp.dot(x_ref[...], w_ref[...], preferred_element_type=jnp.float32)
    if apply_relu:
        h = jnp.maximum(h, 0.0)
    o_ref[...] = h.astype(o_ref.dtype)


# ----------------------------- wrappers --------------------------------------


def prepare_group_l1_mlp_params(group_l1, w0, hidden_ws, wf, *,
                                compute_dtype=jnp.bfloat16):
    """One-time weight prep: fold relu(group_l1) into W0 (in f32), pad, transpose, cast.

    Call this once for static weights and reuse the result across forward calls so the
    pad/transpose/cast pass over the weights is hoisted out of the hot path.
    """
    hidden_dim, input_dim = w0.shape
    output_dim = wf.shape[0]
    in_p = _round_up(input_dim, 128)
    hid_p = _round_up(hidden_dim, 128)
    out_p = _round_up(output_dim, 128)

    def pad2(a, rows, cols):
        return jnp.pad(a, ((0, rows - a.shape[0]), (0, cols - a.shape[1])))

    # Fold the L1 gate into W0's columns at f32 precision BEFORE the compute_dtype cast.
    w0_scaled = (w0.astype(jnp.float32)
                 * jnp.maximum(group_l1, 0.0)[None, :].astype(jnp.float32))

    w0_t = pad2(w0_scaled, hid_p, in_p).T.astype(compute_dtype)            # (in_p, hid_p)
    hws_t = tuple(pad2(w, hid_p, hid_p).T.astype(compute_dtype)
                  for w in hidden_ws)                                      # (hid_p, hid_p)
    wf_t = pad2(wf, out_p, hid_p).T.astype(compute_dtype)                  # (hid_p, out_p)

    return {
        "w0_t": w0_t,
        "hws_t": hws_t,
        "wf_t": wf_t,
        "dims": (int(input_dim), int(hidden_dim), int(output_dim)),
        "compute_dtype": jnp.dtype(compute_dtype),
    }


def _resident_forward(x_p, w0_t, hws_t, wf_t, *, tb, batch_p, out_dtype,
                      weight_bytes, act_io_bytes, vmem_budget):
    num_hidden = len(hws_t)
    in_p, hid_p = w0_t.shape
    out_p = wf_t.shape[1]
    csize = jnp.dtype(w0_t.dtype).itemsize
    osize = jnp.dtype(out_dtype).itemsize

    grid = (batch_p // tb,)
    const = lambda i: (0, 0)
    # Constant-index weights never change blocks -> single buffer (no double buffering).
    wspec = dict(pipeline_mode=pl.Buffered(1))
    in_specs = [
        pl.BlockSpec((tb, in_p), lambda i: (i, 0)),                # x tile (double-buffered)
        pl.BlockSpec((in_p, hid_p), const, **wspec),               # W0^T (gate folded in)
    ]
    in_specs += [pl.BlockSpec((hid_p, hid_p), const, **wspec) for _ in hws_t]
    in_specs += [pl.BlockSpec((hid_p, out_p), const, **wspec)]     # Wf^T
    out_specs = pl.BlockSpec((tb, out_p), lambda i: (i, 0))

    vmem_needed = weight_bytes + act_io_bytes + (2 << 20)          # + internal scratch
    vmem_limit = int(min(max(vmem_needed, 16 << 20), vmem_budget))

    flops = 2 * batch_p * (in_p * hid_p + num_hidden * hid_p * hid_p + hid_p * out_p)
    bytes_accessed = int(batch_p * in_p * csize + weight_bytes + batch_p * out_p * osize)
    cost = pl.CostEstimate(flops=int(flops), transcendentals=0,
                           bytes_accessed=bytes_accessed)

    kernel = functools.partial(_group_l1_mlp_kernel, num_hidden)
    return pl.pallas_call(
        kernel,
        out_shape=jax.ShapeDtypeStruct((batch_p, out_p), out_dtype),
        grid=grid,
        in_specs=in_specs,
        out_specs=out_specs,
        compiler_params=pltpu.CompilerParams(
            dimension_semantics=("parallel",),
            vmem_limit_bytes=vmem_limit,
        ),
        cost_estimate=cost,
    )(x_p, w0_t, *hws_t, wf_t)


def _layerwise_forward(x_p, weights_t, *, tb, batch_p, out_dtype, vmem_budget):
    """Fallback when resident weights exceed the per-core VMEM budget: one batch-tiled
    matmul(+relu) pallas_call per layer, each holding only that layer's weight in VMEM.
    """
    # TODO(synk): stream hidden-layer weights inside a single kernel (emit_pipeline or a
    # manual 2-deep make_async_copy buffer over the layer index) to avoid the
    # inter-layer HBM round trips of this per-layer chain; tile K/N if one layer's
    # weight alone exceeds VMEM.
    grid = (batch_p // tb,)
    const = lambda i: (0, 0)
    h = x_p
    n_layers = len(weights_t)
    for li, w in enumerate(weights_t):
        k_p, n_p = w.shape
        last = li == n_layers - 1
        layer_out_dtype = out_dtype if last else h.dtype
        csize = jnp.dtype(h.dtype).itemsize
        osize = jnp.dtype(layer_out_dtype).itemsize
        vmem_needed = (k_p * n_p * jnp.dtype(w.dtype).itemsize
                       + 2 * tb * (k_p * csize + n_p * osize)
                       + 2 * tb * n_p * 4 + (2 << 20))
        vmem_limit = int(min(max(vmem_needed, 16 << 20), vmem_budget))
        h = pl.pallas_call(
            functools.partial(_linear_kernel, not last),
            out_shape=jax.ShapeDtypeStruct((batch_p, n_p), layer_out_dtype),
            grid=grid,
            in_specs=[
                pl.BlockSpec((tb, k_p), lambda i: (i, 0)),
                pl.BlockSpec((k_p, n_p), const, pipeline_mode=pl.Buffered(1)),
            ],
            out_specs=pl.BlockSpec((tb, n_p), lambda i: (i, 0)),
            compiler_params=pltpu.CompilerParams(
                dimension_semantics=("parallel",),
                vmem_limit_bytes=vmem_limit,
            ),
        )(h, w)
    return h


def group_l1_mlp_apply(params, x, *, batch_tile=None, force_layerwise=False):
    """Run the GroupL1MLP forward on prepared params. x: (batch, input_dim)."""
    input_dim, _, output_dim = params["dims"]
    compute_dtype = params["compute_dtype"]
    w0_t, hws_t, wf_t = params["w0_t"], params["hws_t"], params["wf_t"]
    num_hidden = len(hws_t)

    batch = x.shape[0]
    out_dtype = x.dtype
    in_p, hid_p = w0_t.shape
    out_p = wf_t.shape[1]
    csize = jnp.dtype(compute_dtype).itemsize
    osize = jnp.dtype(out_dtype).itemsize
    # bf16 packs two rows per sublane -> round small batch tiles to 16, else 8.
    sub = 16 if csize < 4 else 8

    vmem_budget = _vmem_budget_bytes()
    # Single-buffered (Buffered(1)) resident weights -> 1x footprint.
    weight_bytes = (in_p * hid_p + num_hidden * hid_p * hid_p + hid_p * out_p) * csize
    headroom = 2 << 20

    def tile_bytes(t):
        io = 2 * t * in_p * csize + 2 * t * out_p * osize   # double-buffered x / out tiles
        act = 2 * t * hid_p * 4                              # f32 layer outputs before cast
        return io + act

    # ---- batch-tile selection ----
    if batch_tile is not None:
        tb = _round_up(min(batch_tile, _round_up(batch, sub)), sub)
    elif batch >= 1024:
        tb = 512
    elif batch > 256:
        tb = 256
    else:
        tb = _round_up(batch, sub)
    # Shrink until weights + per-tile I/O + f32 activations fit the VMEM budget.
    while tb > sub and weight_bytes + tile_bytes(tb) + headroom > vmem_budget:
        tb = max(sub, _round_up(tb // 2, sub))
    batch_p = _round_up(batch, tb)
    # v7x megacore: guarantee >= 2 grid steps when the batch is big enough so
    # dimension_semantics=("parallel",) can shard across both TensorCores.
    if batch_p >= 256 and batch_p // tb < 2:
        tb = _round_up(pl.cdiv(batch_p, 2), sub)
        batch_p = _round_up(batch, tb)

    x_p = jnp.pad(x, ((0, batch_p - batch), (0, in_p - input_dim))).astype(compute_dtype)

    fits_resident = weight_bytes + tile_bytes(tb) + headroom <= vmem_budget
    if fits_resident and not force_layerwise:
        out_padded = _resident_forward(
            x_p, w0_t, hws_t, wf_t, tb=tb, batch_p=batch_p, out_dtype=out_dtype,
            weight_bytes=weight_bytes, act_io_bytes=tile_bytes(tb),
            vmem_budget=vmem_budget)
    else:
        out_padded = _layerwise_forward(
            x_p, (w0_t,) + tuple(hws_t) + (wf_t,), tb=tb, batch_p=batch_p,
            out_dtype=out_dtype, vmem_budget=vmem_budget)

    return out_padded[:batch, :output_dim]


def group_l1_mlp(x, group_l1, w0, hidden_ws, wf, *, compute_dtype=jnp.bfloat16,
                 batch_tile=None, force_layerwise=False):
    """Convenience one-shot wrapper.

    For repeated calls with static weights, call prepare_group_l1_mlp_params() once and
    reuse the result with group_l1_mlp_apply() (weight prep hoisted out of the hot path).
    """
    params = prepare_group_l1_mlp_params(group_l1, w0, hidden_ws, wf,
                                         compute_dtype=compute_dtype)
    return group_l1_mlp_apply(params, x, batch_tile=batch_tile,
                              force_layerwise=force_layerwise)


# ----------------------------- reference & test ------------------------------


def _torch_style_linear_init(key, out_features, in_features):
    # Matches torch.nn.Linear default: U(-1/sqrt(fan_in), 1/sqrt(fan_in)).
    bound = 1.0 / jnp.sqrt(jnp.float32(in_features))
    return jax.random.uniform(
        key, (out_features, in_features), jnp.float32, minval=-bound, maxval=bound)


def reference_forward(x, group_l1, w0, hidden_ws, wf):
    h = x @ (w0 * jnp.maximum(group_l1, 0.0)[None, :]).T
    h = jnp.maximum(h, 0.0)
    for w in hidden_ws:
        h = jnp.maximum(h @ w.T, 0.0)
    return h @ wf.T


if __name__ == "__main__":
    # Small shapes implied by the module: x is (batch, input_dim).
    batch = 8
    input_dim = 16
    hidden_dim = 32
    output_dim = 8
    num_layers = 3  # -> 1 input layer, (num_layers - 1) hidden layers, 1 output layer

    key = jax.random.PRNGKey(0)
    k_x, k_g, k_w0, k_wf, *k_hidden = jax.random.split(key, 4 + (num_layers - 1))

    x = jax.random.normal(k_x, (batch, input_dim), jnp.float32)
    w0 = _torch_style_linear_init(k_w0, hidden_dim, input_dim)
    hidden_ws = [_torch_style_linear_init(k, hidden_dim, hidden_dim) for k in k_hidden]
    wf = _torch_style_linear_init(k_wf, output_dim, hidden_dim)
    # group_l1 is initialized to ones in __init__ but is a trainable parameter; use
    # random values (including negatives) so the relu gate is actually exercised.
    group_l1 = jax.random.normal(k_g, (input_dim,), jnp.float32)

    ref = reference_forward(x, group_l1, w0, hidden_ws, wf)

    # f32 path, resident weights; weight prep hoisted out of the per-call hot path.
    params_f32 = prepare_group_l1_mlp_params(group_l1, w0, hidden_ws, wf,
                                             compute_dtype=jnp.float32)
    out_f32 = jax.block_until_ready(group_l1_mlp_apply(params_f32, x))
    assert out_f32.shape == (batch, output_dim)
    assert jnp.allclose(out_f32, ref, atol=1e-5, rtol=1e-5), "f32 mismatch vs reference"

    # Default bf16-operand path (f32 MXU accumulation; gate folded into W0 in f32).
    out_bf16 = jax.block_until_ready(group_l1_mlp(x, group_l1, w0, hidden_ws, wf))
    assert out_bf16.shape == (batch, output_dim)
    assert jnp.allclose(out_bf16, ref, atol=5e-2, rtol=5e-2), "bf16 mismatch vs reference"

    # Layer-streaming fallback path (used automatically when resident weights exceed
    # the per-core VMEM budget); forced here to validate it end to end.
    out_stream = jax.block_until_ready(
        group_l1_mlp_apply(params_f32, x, force_layerwise=True))
    assert jnp.allclose(out_stream, ref, atol=1e-5, rtol=1e-5), "layerwise mismatch"

    print("KERNEL_OK")
</pallas_src>

<mosaic_0001>
module attributes {stable_mosaic.version = 11 : i64} {
  func.func @_group_l1_mlp_kernel(%arg0: i32, %arg1: memref<8x128xf32, #tpu.memory_space<vmem>>, %arg2: memref<128x128xf32, #tpu.memory_space<vmem>>, %arg3: memref<128x128xf32, #tpu.memory_space<vmem>>, %arg4: memref<128x128xf32, #tpu.memory_space<vmem>>, %arg5: memref<128x128xf32, #tpu.memory_space<vmem>>, %arg6: memref<8x128xf32, #tpu.memory_space<vmem>>) attributes {dimension_semantics = [#tpu.dimension_semantics<parallel>], iteration_bounds = array<i64: 1>, scalar_prefetch = 0 : i64, scratch_operands = 0 : i64, tpu.core_type = #tpu.core_type<tc>, window_params = [{transform_indices = @transform_0, window_bounds = array<i64: 8, 128>}, {pipeline_mode = #tpu.pipeline_mode<synchronous>, transform_indices = @transform_1, window_bounds = array<i64: 128, 128>}, {pipeline_mode = #tpu.pipeline_mode<synchronous>, transform_indices = @transform_2, window_bounds = array<i64: 128, 128>}, {pipeline_mode = #tpu.pipeline_mode<synchronous>, transform_indices = @transform_3, window_bounds = array<i64: 128, 128>}, {pipeline_mode = #tpu.pipeline_mode<synchronous>, transform_indices = @transform_4, window_bounds = array<i64: 128, 128>}, {transform_indices = @transform_5, window_bounds = array<i64: 8, 128>}]} {
    %c0 = arith.constant 0 : index
    %c0_0 = arith.constant 0 : index
    %0 = vector.load %arg1[%c0, %c0_0] : memref<8x128xf32, #tpu.memory_space<vmem>>, vector<8x128xf32>
    %c0_1 = arith.constant 0 : index
    %c0_2 = arith.constant 0 : index
    %1 = vector.load %arg2[%c0_1, %c0_2] : memref<128x128xf32, #tpu.memory_space<vmem>>, vector<128x128xf32>
    %cst = arith.constant dense<0.000000e+00> : vector<8x128xf32>
    %2 = tpu.matmul %0, %1, %cst {dimension_numbers = #tpu.dot_dimension_numbers<[1], [0], [0], [1], [0, 0, 1, 1], [], []>} : vector<8x128xf32>, vector<128x128xf32>, vector<8x128xf32> -> vector<8x128xf32>
    %cst_3 = arith.constant 0.000000e+00 : f32
    %3 = vector.broadcast %cst_3 : f32 to vector<8x128xf32>
    %4 = arith.maximumf %2, %3 : vector<8x128xf32>
    %c0_4 = arith.constant 0 : index
    %c0_5 = arith.constant 0 : index
    %5 = vector.load %arg3[%c0_4, %c0_5] : memref<128x128xf32, #tpu.memory_space<vmem>>, vector<128x128xf32>
    %cst_6 = arith.constant dense<0.000000e+00> : vector<8x128xf32>
    %6 = tpu.matmul %4, %5, %cst_6 {dimension_numbers = #tpu.dot_dimension_numbers<[1], [0], [0], [1], [0, 0, 1, 1], [], []>} : vector<8x128xf32>, vector<128x128xf32>, vector<8x128xf32> -> vector<8x128xf32>
    %cst_7 = arith.constant 0.000000e+00 : f32
    %7 = vector.broadcast %cst_7 : f32 to vector<8x128xf32>
    %8 = arith.maximumf %6, %7 : vector<8x128xf32>
    %c0_8 = arith.constant 0 : index
    %c0_9 = arith.constant 0 : index
    %9 = vector.load %arg4[%c0_8, %c0_9] : memref<128x128xf32, #tpu.memory_space<vmem>>, vector<128x128xf32>
    %cst_10 = arith.constant dense<0.000000e+00> : vector<8x128xf32>
    %10 = tpu.matmul %8, %9, %cst_10 {dimension_numbers = #tpu.dot_dimension_numbers<[1], [0], [0], [1], [0, 0, 1, 1], [], []>} : vector<8x128xf32>, vector<128x128xf32>, vector<8x128xf32> -> vector<8x128xf32>
    %cst_11 = arith.constant 0.000000e+00 : f32
    %11 = vector.broadcast %cst_11 : f32 to vector<8x128xf32>
    %12 = arith.maximumf %10, %11 : vector<8x128xf32>
    %c0_12 = arith.constant 0 : index
    %c0_13 = arith.constant 0 : index
    %13 = vector.load %arg5[%c0_12, %c0_13] : memref<128x128xf32, #tpu.memory_space<vmem>>, vector<128x128xf32>
    %cst_14 = arith.constant dense<0.000000e+00> : vector<8x128xf32>
    %14 = tpu.matmul %12, %13, %cst_14 {dimension_numbers = #tpu.dot_dimension_numbers<[1], [0], [0], [1], [0, 0, 1, 1], [], []>} : vector<8x128xf32>, vector<128x128xf32>, vector<8x128xf32> -> vector<8x128xf32>
    %c0_15 = arith.constant 0 : index
    %c0_16 = arith.constant 0 : index
    %15 = vector.load %arg6[%c0_15, %c0_16] : memref<8x128xf32, #tpu.memory_space<vmem>>, vector<8x128xf32>
    tpu.vector_store %arg6[%c0_15, %c0_16], %14 {strides = array<i32>} : memref<8x128xf32, #tpu.memory_space<vmem>>, vector<8x128xf32>,
    return
  }
  func.func @transform_0(%arg0: i32) -> (i32, i32) {
    %c0_i32 = arith.constant 0 : i32
    %c0_i32_0 = arith.constant 0 : i32
    return %arg0, %c0_i32 : i32, i32
  }
  func.func @transform_1(%arg0: i32) -> (i32, i32) {
    %c0_i32 = arith.constant 0 : i32
    %c0_i32_0 = arith.constant 0 : i32
    %c0_i32_1 = arith.constant 0 : i32
    return %c0_i32, %c0_i32_0 : i32, i32
  }
  func.func @transform_2(%arg0: i32) -> (i32, i32) {
    %c0_i32 = arith.constant 0 : i32
    %c0_i32_0 = arith.constant 0 : i32
    %c0_i32_1 = arith.constant 0 : i32
    return %c0_i32, %c0_i32_0 : i32, i32
  }
  func.func @transform_3(%arg0: i32) -> (i32, i32) {
    %c0_i32 = arith.constant 0 : i32
    %c0_i32_0 = arith.constant 0 : i32
    %c0_i32_1 = arith.constant 0 : i32
    return %c0_i32, %c0_i32_0 : i32, i32
  }
  func.func @transform_4(%arg0: i32) -> (i32, i32) {
    %c0_i32 = arith.constant 0 : i32
    %c0_i32_0 = arith.constant 0 : i32
    %c0_i32_1 = arith.constant 0 : i32
    return %c0_i32, %c0_i32_0 : i32, i32
  }
  func.func @transform_5(%arg0: i32) -> (i32, i32) {
    %c0_i32 = arith.constant 0 : i32
    %c0_i32_0 = arith.constant 0 : i32
    return %arg0, %c0_i32 : i32, i32
  }
}

</mosaic_0001>

<bundles_post_ra>
// kernel: tpu_custom_call.1
= control target key start
LH: loop header
LB: loop body
LE: loop exit
PB: predicated region body
PF: predicated region fallthrough
CT: control target
= control target key end

     0   :  { %10 = vsyncpa [#allocation3], 0  ;;  %s1073_s0 = inlined_call_operand.hbm [shape: f32[8,128], index: 0, kind: input, shape index: {}]   ;;  %s1074_s1 = inlined_call_operand.hbm [shape: f32[128,128], index: 1, kind: input, shape index: {}]   ;;  %s1075_s2 = inlined_call_operand.hbm [shape: f32[128,128], index: 2, kind: input, shape index: {}]   ;;  %s1076_s3 = inlined_call_operand.hbm [shape: f32[128,128], index: 3, kind: input, shape index: {}]   ;;  %s1077_s4 = inlined_call_operand.hbm [shape: f32[128,128], index: 4, kind: input, shape index: {}]   ;;  %s1078_s5 = inlined_call_operand.hbm [shape: f32[8,128], index: 5, kind: output, shape index: {}]  }
   0x1   :  { %11 = vsyncpa [#allocation6], 0 }
   0x2   :  { %12 = vsyncpa [#allocation9], 0 }
   0x3   :  { %13 = vsyncpa [#allocation4], 0  ;;  %s908_s18 = smov [#allocation5]   ;;  %s768_s22 = scalar_lea.hbm %s1074_s1, 2048 }
   0x4   :  { %s29_s19 = sshll.u32 %s908_s18, 4  ;;  %p769_p0 = scmp.ne.s32.totalorder %s1074_s1, %s768_s22  ;;  %s30_s19 = int_to_ptr.vmem [resolvable:$true] %s29_s19 }
   0x5   :  { %p772_p1 = scmp.lt.u32.totalorder %s768_s22, %s1074_s1 }
   0x7   :  { %p774_p2 = pnand %p772_p1, %p769_p0 }
   0x9   :  { %777 = shalt.err (!%p774_p2)
}
   0xa   :  { %s778_s27 = scalar_lea.vmem %s30_s19, 2048  ;;  %p783_p4 = scmp.lt.s32.totalorder %s30_s19, %s30_s19 }
   0xb   :  { %p779_p3 = scmp.ne.s32.totalorder %s30_s19, %s778_s27  ;;  %p784_p5 = scmp.lt.s32.totalorder %s778_s27, %s778_s27 }
   0xd   :  { %p785_p6 = por %p784_p5, %p783_p4 }
   0xf   :  { %p786_p7 = pnand %p785_p6, %p779_p3 }
  0x11   :  { %789 = shalt.err (!%p786_p7)
}
  0x12   :  { %s909_s28 = smov 128   ;;  %s910_s29 = smov 8  }
  0x13   :  { %35 = dma.hbm_to_vmem [thread:$0]  %s1074_s1, 2048, %s30_s19, [#allocation6], %s909_s28, %s909_s28, %s910_s29  }
  0x14   :  { %s911_s7 = smov [#allocation8]   ;;  %s912_s9 = smov [#allocation2]  }
  0x15   :  { %s53_s8 = sshll.u32 %s911_s7, 4  ;;  %s20_s10 = sshll.u32 %s912_s9, 4  ;;  %s54_s8 = int_to_ptr.vmem [resolvable:$true] %s53_s8  ;;  %s21_s10 = int_to_ptr.vmem [resolvable:$true] %s20_s10 }
  0x16   :  { %s790_s13 = scalar_lea.hbm %s1076_s3, 2048 }
  0x17   :  { %p791_p8 = scmp.ne.s32.totalorder %s1076_s3, %s790_s13  ;;  %p794_p9 = scmp.lt.u32.totalorder %s790_s13, %s1076_s3 }
  0x19   :  { %p796_p10 = pnand %p794_p9, %p791_p8 }
  0x1b   :  { %799 = shalt.err (!%p796_p10)
}
  0x1c   :  { %s800_s1 = scalar_lea.vmem %s54_s8, 2048  ;;  %p805_p12 = scmp.lt.s32.totalorder %s54_s8, %s54_s8 }
  0x1d   :  { %p801_p11 = scmp.ne.s32.totalorder %s54_s8, %s800_s1  ;;  %p806_p13 = scmp.lt.s32.totalorder %s800_s1, %s800_s1 }
  0x1f   :  { %p807_p0 = por %p806_p13, %p805_p12 }
  0x21   :  { %p808_p1 = pnand %p807_p0, %p801_p11 }
  0x23   :  { %811 = shalt.err (!%p808_p1)
}
  0x24   :  { %59 = dma.hbm_to_vmem [thread:$0]  %s1076_s3, 2048, %s54_s8, [#allocation9], %s909_s28, %s909_s28, %s910_s29  }
  0x25   :  { %s812_s22 = scalar_lea.hbm %s1073_s0, 128 }
  0x26   :  { %p813_p2 = scmp.ne.s32.totalorder %s1073_s0, %s812_s22  ;;  %p816_p3 = scmp.lt.u32.totalorder %s812_s22, %s1073_s0 }
  0x28   :  { %p818_p4 = pnand %p816_p3, %p813_p2 }
  0x2a   :  { %821 = shalt.err (!%p818_p4)
}
  0x2b   :  { %s822_s27 = scalar_lea.vmem %s21_s10, 128  ;;  %p827_p6 = scmp.lt.s32.totalorder %s21_s10, %s21_s10 }
  0x2c   :  { %p823_p5 = scmp.ne.s32.totalorder %s21_s10, %s822_s27  ;;  %p828_p7 = scmp.lt.s32.totalorder %s822_s27, %s822_s27 }
  0x2e   :  { %p829_p8 = por %p828_p7, %p827_p6 }
  0x30   :  { %p830_p9 = pnand %p829_p8, %p823_p5 }
  0x32   :  { %833 = shalt.err (!%p830_p9)
}
  0x33   :  { %23 = dma.hbm_to_vmem [thread:$0]  %s1073_s0, 128, %s21_s10, [#allocation3]  }
  0x34   :  { %s913_s6 = smov [#allocation7]   ;;  %s914_s8 = smov [#allocation10]  }
  0x35   :  { %s41_s7 = sshll.u32 %s913_s6, 4  ;;  %s65_s9 = sshll.u32 %s914_s8, 4  ;;  %s42_s7 = int_to_ptr.vmem [resolvable:$true] %s41_s7  ;;  %s66_s9 = int_to_ptr.vmem [resolvable:$true] %s65_s9 }
  0x36   :  { %s834_s13 = scalar_lea.hbm %s1075_s2, 2048 }
  0x37   :  { %p835_p10 = scmp.ne.s32.totalorder %s1075_s2, %s834_s13  ;;  %p838_p11 = scmp.lt.u32.totalorder %s834_s13, %s1075_s2 }
  0x39   :  { %p840_p12 = pnand %p838_p11, %p835_p10 }
  0x3b   :  { %843 = shalt.err (!%p840_p12)
}
  0x3c   :  { %s844_s0 = scalar_lea.vmem %s42_s7, 2048  ;;  %p849_p0 = scmp.lt.s32.totalorder %s42_s7, %s42_s7 }
  0x3d   :  { %p845_p13 = scmp.ne.s32.totalorder %s42_s7, %s844_s0  ;;  %p850_p1 = scmp.lt.s32.totalorder %s844_s0, %s844_s0 }
  0x3f   :  { %p851_p2 = por %p850_p1, %p849_p0 }
  0x41   :  { %p852_p3 = pnand %p851_p2, %p845_p13 }
  0x43   :  { %855 = shalt.err (!%p852_p3)
}
  0x44   :  { %47 = dma.hbm_to_vmem [thread:$0]  %s1075_s2, 2048, %s42_s7, [#allocation6], %s909_s28, %s909_s28, %s910_s29  }
  0x45   :  { %s856_s20 = scalar_lea.hbm %s1077_s4, 2048 }
  0x46   :  { %p857_p4 = scmp.ne.s32.totalorder %s1077_s4, %s856_s20  ;;  %p860_p5 = scmp.lt.u32.totalorder %s856_s20, %s1077_s4 }
  0x48   :  { %p862_p6 = pnand %p860_p5, %p857_p4 }
  0x4a   :  { %865 = shalt.err (!%p862_p6)
}
  0x4b   :  { %s866_s25 = scalar_lea.vmem %s66_s9, 2048  ;;  %p871_p8 = scmp.lt.s32.totalorder %s66_s9, %s66_s9 }
  0x4c   :  { %p867_p7 = scmp.ne.s32.totalorder %s66_s9, %s866_s25  ;;  %p872_p9 = scmp.lt.s32.totalorder %s866_s25, %s866_s25 }
  0x4e   :  { %p873_p10 = por %p872_p9, %p871_p8 }
  0x50   :  { %p874_p11 = pnand %p873_p10, %p867_p7 }
  0x52   :  { %877 = shalt.err (!%p874_p11)
}
  0x53   :  { %71 = dma.hbm_to_vmem [thread:$0]  %s1077_s4, 2048, %s66_s9, [#allocation9], %s909_s28, %s909_s28, %s910_s29  }
  0x54   :  { %900 = dma.done.wait [#allocation3], 128  }
  0x55   :  { %901 = vsyncadd [#allocation3], 4294967168 }
  0x56   :  { %902 = dma.done.wait [#allocation6], 4096  }
  0x57   :  { %903 = vsyncadd [#allocation6], 4294963200 }
  0x58   :  { %904 = dma.done.wait [#allocation9], 4096  }
  0x59   :  { %905 = vsyncadd [#allocation9], 4294963200  ;;  %v915_v0 = vmov 0.0|0.0   ;;  %vm916_vm0 = vmmov 0   ;;  %v917_v1 = vmov 0.0   ;;  %v88_v2 = vld [vmem:[#allocation5] sm:$0xff] }
  0x5a   :  { %661 = vmatprep.subr.bf16.mxu0 %v915_v0  ;;  %553 = vmatprep.mubr.msk.f32.mxu0 %vm916_vm0, %v917_v1  ;;  %v89_v3 = vld [vmem:[#allocation5 + $0x8] sm:$0xff]  ;;  %v90_v4 = vld [vmem:[#allocation5 + $0x10] sm:$0xff]  ;;  %v91_v6 = vld [vmem:[#allocation5 + $0x18] sm:$0xff]  ;;  %s918_s4 = smov [#allocation11]  }
  0x5b   :  { %685 = vmatprep.subr.bf16.mxu1 %v915_v0  ;;  %588 = vmatprep.mubr.msk.f32.mxu1 %vm916_vm0, %v917_v1  ;;  %v662_v5 = vpack.c.bf16 %v89_v3, %v88_v2  ;;  %v665_v7 = vpack.c.bf16 %v91_v6, %v90_v4  ;;  %v92_v8 = vld [vmem:[#allocation5 + $0x20] sm:$0xff]  ;;  %v93_v9 = vld [vmem:[#allocation5 + $0x28] sm:$0xff]  ;;  %v177_v12 = vld [vmem:[#allocation7 + $0x10] sm:$0xff]  ;;  %s442_s28 = sshll.u32 %s918_s4, 4  ;;  %s443_s28 = int_to_ptr.vmem [resolvable:$true] %s442_s28 }
  0x5c   :  { %v175_v10 = vld [vmem:[#allocation7] sm:$0xff]  ;;  %v176_v11 = vld [vmem:[#allocation7 + $0x8] sm:$0xff]  ;;  %v178_v13 = vld [vmem:[#allocation7 + $0x18] sm:$0xff]  ;;  %v668_v14 = vpack.c.bf16 %v93_v9, %v92_v8  ;;  %s878_s29 = scalar_lea.vmem %s443_s28, 128  ;;  %p883_p13 = scmp.lt.s32.totalorder %s443_s28, %s443_s28 }
  0x5d   :  { %663 = vmatpush3.bf16.msra.mxu0 %v662_v5  ;;  %v686_v15 = vpack.c.bf16 %v176_v11, %v175_v10  ;;  %v94_v16 = vld [vmem:[#allocation5 + $0x30] sm:$0xff]  ;;  %v95_v17 = vld [vmem:[#allocation5 + $0x38] sm:$0xff]  ;;  %v689_v18 = vpack.c.bf16 %v178_v13, %v177_v12  ;;  %v179_v19 = vld [vmem:[#allocation7 + $0x20] sm:$0xff]  ;;  %p879_p12 = scmp.ne.s32.totalorder %s443_s28, %s878_s29  ;;  %p884_p0 = scmp.lt.s32.totalorder %s878_s29, %s878_s29 }
  0x5e   :  { %664 = vmatprep.subr.bf16.mxu0 %v915_v0  ;;  %v180_v20 = vld [vmem:[#allocation7 + $0x28] sm:$0xff]  ;;  %v671_v21 = vpack.c.bf16 %v95_v17, %v94_v16  ;;  %v96_v22 = vld [vmem:[#allocation5 + $0x40] sm:$0xff]  ;;  %v181_v25 = vld [vmem:[#allocation7 + $0x30] sm:$0xff] }
  0x5f   :  { %687 = vmatpush3.bf16.msra.mxu1 %v686_v15  ;;  %v97_v23 = vld [vmem:[#allocation5 + $0x48] sm:$0xff]  ;;  %v692_v24 = vpack.c.bf16 %v180_v20, %v179_v19  ;;  %v182_v26 = vld [vmem:[#allocation7 + $0x38] sm:$0xff]  ;;  %v98_v28 = vld [vmem:[#allocation5 + $0x50] sm:$0xff]  ;;  %p885_p1 = por %p884_p0, %p883_p13 }
  0x60   :  { %688 = vmatprep.subr.bf16.mxu1 %v915_v0  ;;  %v674_v27 = vpack.c.bf16 %v97_v23, %v96_v22  ;;  %v99_v29 = vld [vmem:[#allocation5 + $0x58] sm:$0xff]  ;;  %v695_v30 = vpack.c.bf16 %v182_v26, %v181_v25  ;;  %v183_v31 = vld [vmem:[#allocation7 + $0x40] sm:$0xff]  ;;  %v184_v32 = vld [vmem:[#allocation7 + $0x48] sm:$0xff] }
  0x61   :  { %666 = vmatpush3.bf16.msra.mxu0 %v665_v7  ;;  %v677_v33 = vpack.c.bf16 %v99_v29, %v98_v28  ;;  %v100_v34 = vld [vmem:[#allocation5 + $0x60] sm:$0xff]  ;;  %v101_v35 = vld [vmem:[#allocation5 + $0x68] sm:$0xff]  ;;  %v698_v36 = vpack.c.bf16 %v184_v32, %v183_v31  ;;  %v185_v37 = vld [vmem:[#allocation7 + $0x50] sm:$0xff]  ;;  %p886_p2 = pnand %p885_p1, %p879_p12 }
  0x62   :  { %667 = vmatprep.subr.bf16.mxu0 %v915_v0  ;;  %v186_v38 = vld [vmem:[#allocation7 + $0x58] sm:$0xff]  ;;  %v680_v39 = vpack.c.bf16 %v101_v35, %v100_v34  ;;  %v102_v40 = vld [vmem:[#allocation5 + $0x70] sm:$0xff]  ;;  %v187_v43 = vld [vmem:[#allocation7 + $0x60] sm:$0xff] }
  0x63   :  { %690 = vmatpush3.bf16.msra.mxu1 %v689_v18  ;;  %v103_v41 = vld [vmem:[#allocation5 + $0x78] sm:$0xff]  ;;  %v701_v42 = vpack.c.bf16 %v186_v38, %v185_v37  ;;  %v188_v44 = vld [vmem:[#allocation7 + $0x68] sm:$0xff]  ;;  %v189_v48 = vld [vmem:[#allocation7 + $0x70] sm:$0xff] }
  0x64   :  { %691 = vmatprep.subr.bf16.mxu1 %v915_v0  ;;  %v683_v45 = vpack.c.bf16 %v103_v41, %v102_v40  ;;  %v704_v46 = vpack.c.bf16 %v188_v44, %v187_v43  ;;  %v87_v47 = vld [vmem:[#allocation2] sm:$0xff]  ;;  %v262_v51 = vld [vmem:[#allocation8] sm:$0xff]  ;;  %v263_v52 = vld [vmem:[#allocation8 + $0x8] sm:$0xff] }
  0x65   :  { %669 = vmatpush3.bf16.msra.mxu0 %v668_v14  ;;  %v190_v49 = vld [vmem:[#allocation7 + $0x78] sm:$0xff]  ;;  %v264_v53 = vld [vmem:[#allocation8 + $0x10] sm:$0xff]  ;;  %v710_v54 = vpack.c.bf16 %v263_v52, %v262_v51  ;;  %v266_v57 = vld [vmem:[#allocation8 + $0x20] sm:$0xff] }
  0x66   :  { %670 = vmatprep.subr.bf16.mxu0 %v915_v0  ;;  %v707_v50 = vpack.c.bf16 %v190_v49, %v189_v48  ;;  %v265_v55 = vld [vmem:[#allocation8 + $0x18] sm:$0xff]  ;;  %v267_v58 = vld [vmem:[#allocation8 + $0x28] sm:$0xff]  ;;  %v268_v60 = vld [vmem:[#allocation8 + $0x30] sm:$0xff] }
  0x67   :  { %693 = vmatpush3.bf16.msra.mxu1 %v692_v24  ;;  %v713_v56 = vpack.c.bf16 %v265_v55, %v264_v53  ;;  %v716_v59 = vpack.c.bf16 %v267_v58, %v266_v57  ;;  %v269_v61 = vld [vmem:[#allocation8 + $0x38] sm:$0xff]  ;;  %v270_v63 = vld [vmem:[#allocation8 + $0x40] sm:$0xff]  ;;  %v271_v2 = vld [vmem:[#allocation8 + $0x48] sm:$0xff] }
  0x68   :  { %694 = vmatprep.subr.bf16.mxu1 %v915_v0  ;;  %v719_v62 = vpack.c.bf16 %v269_v61, %v268_v60  ;;  %v722_v3 = vpack.c.bf16 %v271_v2, %v270_v63  ;;  %v272_v4 = vld [vmem:[#allocation8 + $0x50] sm:$0xff]  ;;  %v273_v5 = vld [vmem:[#allocation8 + $0x58] sm:$0xff]  ;;  %v274_v7 = vld [vmem:[#allocation8 + $0x60] sm:$0xff] }
  0x69   :  { %672 = vmatpush3.bf16.msra.mxu0 %v671_v21  ;;  %v725_v6 = vpack.c.bf16 %v273_v5, %v272_v4  ;;  %v275_v8 = vld [vmem:[#allocation8 + $0x68] sm:$0xff]  ;;  %v276_v13 = vld [vmem:[#allocation8 + $0x70] sm:$0xff]  ;;  %v277_v14 = vld [vmem:[#allocation8 + $0x78] sm:$0xff] }
  0x6a   :  { %673 = vmatprep.subr.bf16.mxu0 %v915_v0  ;;  %v728_v9 = vpack.c.bf16 %v275_v8, %v274_v7  ;;  %v731_v15 = vpack.c.bf16 %v277_v14, %v276_v13  ;;  %v349_v16 = vld [vmem:[#allocation10] sm:$0xff]  ;;  %v350_v17 = vld [vmem:[#allocation10 + $0x8] sm:$0xff]  ;;  %v351_v18 = vld [vmem:[#allocation10 + $0x10] sm:$0xff] }
  0x6b   :  { %696 = vmatpush3.bf16.msra.mxu1 %v695_v30  ;;  %v734_v19 = vpack.c.bf16 %v350_v17, %v349_v16  ;;  %v352_v20 = vld [vmem:[#allocation10 + $0x18] sm:$0xff]  ;;  %v353_v22 = vld [vmem:[#allocation10 + $0x20] sm:$0xff]  ;;  %v354_v23 = vld [vmem:[#allocation10 + $0x28] sm:$0xff] }
  0x6c   :  { %697 = vmatprep.subr.bf16.mxu1 %v915_v0  ;;  %v737_v21 = vpack.c.bf16 %v352_v20, %v351_v18  ;;  %v740_v24 = vpack.c.bf16 %v354_v23, %v353_v22  ;;  %v356_v25 = vld [vmem:[#allocation10 + $0x38] sm:$0xff]  ;;  %v358_v28 = vld [vmem:[#allocation10 + $0x48] sm:$0xff]  ;;  %v359_v30 = vld [vmem:[#allocation10 + $0x50] sm:$0xff] }
  0x6d   :  { %675 = vmatpush3.bf16.msra.mxu0 %v674_v27  ;;  %v357_v27 = vld [vmem:[#allocation10 + $0x40] sm:$0xff]  ;;  %v360_v31 = vld [vmem:[#allocation10 + $0x58] sm:$0xff]  ;;  %v362_v34 = vld [vmem:[#allocation10 + $0x68] sm:$0xff] }
  0x6e   :  { %676 = vmatprep.subr.bf16.mxu0 %v915_v0  ;;  %v746_v29 = vpack.c.bf16 %v358_v28, %v357_v27  ;;  %v749_v32 = vpack.c.bf16 %v360_v31, %v359_v30  ;;  %v364_v40 = vld [vmem:[#allocation10 + $0x78] sm:$0xff] }
  0x6f   :  { %699 = vmatpush3.bf16.msra.mxu1 %v698_v36 }
  0x70   :  { %700 = vmatprep.subr.bf16.mxu1 %v915_v0 }
  0x71   :  { %678 = vmatpush3.bf16.msra.mxu0 %v677_v33  ;;  %v361_v33 = vld [vmem:[#allocation10 + $0x60] sm:$0xff] }
  0x72   :  { %679 = vmatprep.subr.bf16.mxu0 %v915_v0  ;;  %v752_v35 = vpack.c.bf16 %v362_v34, %v361_v33 }
  0x73   :  { %702 = vmatpush3.bf16.msra.mxu1 %v701_v42 }
  0x74   :  { %703 = vmatprep.subr.bf16.mxu1 %v915_v0 }
  0x75   :  { %681 = vmatpush3.bf16.msra.mxu0 %v680_v39  ;;  %v363_v39 = vld [vmem:[#allocation10 + $0x70] sm:$0xff] }
  0x76   :  { %682 = vmatprep.subr.bf16.mxu0 %v915_v0  ;;  %v755_v41 = vpack.c.bf16 %v364_v40, %v363_v39 }
  0x77   :  { %705 = vmatpush3.bf16.msra.mxu1 %v704_v46 }
  0x78   :  { %706 = vmatprep.subr.bf16.mxu1 %v915_v0 }
  0x79   :  { %684 = vmatpush3.bf16.msra.mxu0 %v683_v45 }
  0x7a   :  { %709 = vmatprep.subr.bf16.mxu0 %v915_v0 }
  0x7b   :  { %708 = vmatpush3.bf16.msra.mxu1 %v707_v50 }
  0x7c   :  { %554 = vmatmul.mubr.f32.vlgmr.msra.gmra.mrb[0].mxu0 %v87_v47  ;;  %733 = vmatprep.subr.bf16.mxu1 %v915_v0 }
  0x7d   :  { %623 = vmatprep.mubr.msk.f32.mxu0 %vm916_vm0, %v917_v1  ;;  %711 = vmatpush3.bf16.msra.mxu0 %v710_v54 }
  0x7e   :  { %712 = vmatprep.subr.bf16.mxu0 %v915_v0 }
  0x81   :  { %714 = vmatpush3.bf16.msra.mxu0 %v713_v56 }
  0x82   :  { %715 = vmatprep.subr.bf16.mxu0 %v915_v0 }
  0x85   :  { %717 = vmatpush3.bf16.msra.mxu0 %v716_v59 }
  0x86   :  { %718 = vmatprep.subr.bf16.mxu0 %v915_v0 }
  0x89   :  { %720 = vmatpush3.bf16.msra.mxu0 %v719_v62 }
  0x8a   :  { %721 = vmatprep.subr.bf16.mxu0 %v915_v0 }
  0x8d   :  { %723 = vmatpush3.bf16.msra.mxu0 %v722_v3 }
  0x8e   :  { %724 = vmatprep.subr.bf16.mxu0 %v915_v0 }
  0x91   :  { %726 = vmatpush3.bf16.msra.mxu0 %v725_v6 }
  0x92   :  { %727 = vmatprep.subr.bf16.mxu0 %v915_v0 }
  0x95   :  { %729 = vmatpush3.bf16.msra.mxu0 %v728_v9 }
  0x96   :  { %730 = vmatprep.subr.bf16.mxu0 %v915_v0 }
  0x99   :  { %732 = vmatpush3.bf16.msra.mxu0 %v731_v15 }
 0x14f   :  { %v170_v10 = vpop.f32.mrb[0].mxu0 }
 0x150   :  { %v174_v11 = vmax.f32 %v170_v10, 0.0  ;;  %v555_v12 = vpop.f32.mrb[1].mxu0 }
 0x152   :  { %589 = vmatmul.mubr.f32.vlgmr.msra.gmra.mrb[0].mxu1 %v174_v11 }
 0x153   :  { %658 = vmatprep.mubr.msk.f32.mxu1 %vm916_vm0, %v917_v1  ;;  %735 = vmatpush3.bf16.msra.mxu1 %v734_v19  ;;  %v355_v1 = vld [vmem:[#allocation10 + $0x30] sm:$0xff] }
 0x154   :  { %736 = vmatprep.subr.bf16.mxu1 %v915_v0  ;;  %v743_v26 = vpack.c.bf16 %v356_v25, %v355_v1 }
 0x157   :  { %738 = vmatpush3.bf16.msra.mxu1 %v737_v21 }
 0x158   :  { %739 = vmatprep.subr.bf16.mxu1 %v915_v0 }
 0x15b   :  { %741 = vmatpush3.bf16.msra.mxu1 %v740_v24 }
 0x15c   :  { %742 = vmatprep.subr.bf16.mxu1 %v915_v0 }
 0x15f   :  { %744 = vmatpush3.bf16.msra.mxu1 %v743_v26 }
 0x160   :  { %745 = vmatprep.subr.bf16.mxu1 %v915_v0 }
 0x163   :  { %747 = vmatpush3.bf16.msra.mxu1 %v746_v29 }
 0x164   :  { %748 = vmatprep.subr.bf16.mxu1 %v915_v0 }
 0x167   :  { %750 = vmatpush3.bf16.msra.mxu1 %v749_v32 }
 0x168   :  { %751 = vmatprep.subr.bf16.mxu1 %v915_v0 }
 0x16b   :  { %753 = vmatpush3.bf16.msra.mxu1 %v752_v35 }
 0x16c   :  { %754 = vmatprep.subr.bf16.mxu1 %v915_v0 }
 0x16f   :  { %756 = vmatpush3.bf16.msra.mxu1 %v755_v41 }
 0x225   :  { %v257_v36 = vpop.f32.mrb[0].mxu1 }
 0x226   :  { %v261_v37 = vmax.f32 %v257_v36, 0.0  ;;  %v590_v38 = vpop.f32.mrb[1].mxu1 }
 0x228   :  { %624 = vmatmul.mubr.f32.vlgmr.msra.gmra.mrb[2].mxu0 %v261_v37 }
 0x2fb   :  { %v344_v42 = vpop.f32.mrb[2].mxu0 }
 0x2fc   :  { %v348_v43 = vmax.f32 %v344_v42, 0.0  ;;  %v625_v44 = vpop.f32.mrb[3].mxu0 }
 0x2fe   :  { %659 = vmatmul.mubr.f32.vlgmr.msra.gmra.mrb[2].mxu1 %v348_v43 }
 0x3d1   :  { %v431_v45 = vpop.f32.mrb[2].mxu1 }
 0x3d2   :  { %435 = vst [vmem:[#allocation11] sm:$0xff] %v431_v45  ;;  %v660_v46 = vpop.f32.mrb[3].mxu1 }
 0x3d3   :  { %889 = shalt.err (!%p886_p2)
}
 0x3d4   :  { %s890_s30 = scalar_lea.hbm %s1078_s5, 128 }
 0x3d5   :  { %p891_p3 = scmp.ne.s32.totalorder %s1078_s5, %s890_s30  ;;  %p894_p4 = scmp.lt.u32.totalorder %s890_s30, %s1078_s5 }
 0x3d7   :  { %p896_p5 = pnand %p894_p4, %p891_p3 }
 0x3d9   :  { %899 = shalt.err (!%p896_p5)
}
 0x3da   :  { %445 = dma.vmem_to_hbm [thread:$0]  %s443_s28, 128, %s1078_s5, [#allocation4]  }
 0x3db   :  { %906 = dma.done.wait [#allocation4], 128  }
 0x3dc   :  { %907 = vsyncadd [#allocation4], 4294967168 }
 0x3dd   :  { %449 = vsyncpa [#allocation3], 1 }
 0x3de   :  { %450 = vsyncpa [#allocation6], 1 }
 0x3df   :  { %451 = vsyncpa [#allocation9], 1 }
 0x3e0   :  { %452 = vsyncpa [#allocation4], 1 }

</bundles_post_ra>
